<compile_context>
chip_gen: v7x
topology: tpu7x:2x2x1
jax: 0.10.0
libtpu: 0.0.40
codegen_flags: <defaults>
</compile_context>

<pallas_src>
import jax
import jax.numpy as jnp
from jax.experimental import pallas as pl
from jax.experimental.pallas import tpu as pltpu

LANE = 128            # TPU lane width
HIDDEN = 512          # cnn_fc / vit_fc / abcd_fc output dim
VIT_DIM = 768         # ViT feature dim
NUM_ABCD = 5
NUM_CLASSES = 3
COS_SCALE = 10.0
EPS = 1e-12           # F.normalize eps
A_PAD = 128           # abcd features padded to a full lane group
NC_PAD = 128          # classes padded to a lane-dense output width


# --------------------------------------------------------------------------
# Tile selection: batch tile (rows = b_tile*C) and HW tile.
# --------------------------------------------------------------------------
def _choose_tiles(B, C, HW, itemsize):
    budget = 6 << 20                       # bytes per single x buffer
    divs8 = [d for d in range(8, min(B, 128) + 1, 8) if B % d == 0]
    multi = [d for d in divs8 if B // d >= 2]
    cands = []
    if multi:
        cands.append(max(multi))           # >=2 batch tiles (v7x: feed 2 TCs)
    if divs8:
        cands.append(max(divs8))
    cands.append(B)                        # full-extent tile: always legal
    ordered = list(dict.fromkeys(cands))
    for b_tile in ordered:
        rows = b_tile * C
        max_cols = min(budget // max(rows * itemsize, 1), 32768)
        if max_cols < LANE:
            continue
        if HW <= max_cols:
            return b_tile, HW
        t = (max_cols // LANE) * LANE
        while t >= LANE:
            if HW % t == 0:
                return b_tile, t
            t -= LANE
    # awkward H*W (no 128-multiple divisor fits the budget): smallest batch
    # tile + full HW extent; the vmem_limit below is raised accordingly.
    b_tile = min(ordered, key=lambda d: d * C)
    return b_tile, HW


# --------------------------------------------------------------------------
# Pallas kernel factory: GAP reduction over HW tiles + fused head at the end.
# --------------------------------------------------------------------------
def _make_kernel(hw_tile, hw_total):
    n_chunks, rem = divmod(hw_tile, LANE)
    inv_hw = 1.0 / float(hw_total)

    def kernel(x_ref, abcd_ref, sel_ref, wexp_ref, b_all_ref,
               w_abcd_ref, w_cls_ref, coef_ref, out_ref, acc_ref):
        hw = pl.program_id(1)

        @pl.when(hw == 0)
        def _():
            acc_ref[...] = jnp.zeros_like(acc_ref)

        # ---- GAP partial sum for this HW tile -----------------------------
        # Unrolled 128-lane VPU adds stay in vregs; the (rows, 1) accumulator
        # is touched exactly once per grid step.
        if n_chunks:
            s = x_ref[:, 0:LANE].astype(jnp.float32)
            for k in range(1, n_chunks):
                s = s + x_ref[:, k * LANE:(k + 1) * LANE].astype(jnp.float32)
            part = jnp.sum(s, axis=-1, keepdims=True)
            if rem:
                part = part + jnp.sum(
                    x_ref[:, n_chunks * LANE:].astype(jnp.float32),
                    axis=-1, keepdims=True)
        else:  # hw_tile < 128 (tiny spatial extent)
            part = jnp.sum(x_ref[...].astype(jnp.float32),
                           axis=-1, keepdims=True)
        acc_ref[...] += part

        # ---- head: runs once per batch tile, at the last HW step ----------
        @pl.when(hw == pl.num_programs(1) - 1)
        def _():
            poolcol = acc_ref[...] * inv_hw                     # (rows, 1)
            # row-space -> (batch, channel) regrouping + pre-composed
            # stub@fc weights, all in one small MXU matmul.
            pre = jnp.dot(sel_ref[...], poolcol * wexp_ref[...],
                          preferred_element_type=jnp.float32)   # (b_tile,1024)
            cnn_h = jnp.maximum(pre[:, :HIDDEN] + b_all_ref[0:1, :], 0.0)
            vit_h = jnp.maximum(pre[:, HIDDEN:] + b_all_ref[1:2, :], 0.0)
            abcd_h = jnp.maximum(
                jnp.dot(abcd_ref[...], w_abcd_ref[...],
                        preferred_element_type=jnp.float32)
                + b_all_ref[2:3, :], 0.0)

            alpha = coef_ref[0]
            beta = coef_ref[1]
            gamma = coef_ref[2]             # 1 - alpha - beta (precomputed)
            combined = jnp.maximum(
                alpha * cnn_h + beta * vit_h + gamma * abcd_h, 0.0)

            # F.normalize: x * rsqrt(max(||x||^2, eps^2))
            sq = jnp.sum(combined * combined, axis=-1, keepdims=True)
            x_norm = combined * jax.lax.rsqrt(jnp.maximum(sq, EPS * EPS))

            # classifier weight is pre-normalized & pre-scaled on the host
            out_ref[...] = jnp.dot(x_norm, w_cls_ref[...],
                                   preferred_element_type=jnp.float32)

    return kernel


# --------------------------------------------------------------------------
# Wrapper: host-side packing / pre-composition and the pallas_call.
# --------------------------------------------------------------------------
def resnet_cosine_swin_forward(x, abcd_features, params, *, hw_tile=None):
    B, C, H, W = x.shape
    HW = H * W
    f32 = jnp.float32

    abcd = abcd_features
    if abcd.ndim == 1:                      # mirrors torch unsqueeze(0)
        abcd = abcd[None, :]
    if abcd.shape[0] != B:                  # torch-style broadcast in the mix
        abcd = jnp.broadcast_to(abcd, (B, abcd.shape[1]))
    n_abcd = abcd.shape[1]
    assert n_abcd <= A_PAD

    b_tile, auto_hw = _choose_tiles(B, C, HW, x.dtype.itemsize)
    if hw_tile is None:
        hw_tile = auto_hw
    assert hw_tile == HW or (HW % hw_tile == 0 and hw_tile % LANE == 0)
    rows = b_tile * C
    grid = (B // b_tile, HW // hw_tile)

    # x: free reshape, native dtype (no extra HBM pass for a cast).
    x_flat = x.reshape(B * C, HW)

    # ---- small tensors: host-side packing / pre-composition ----------------
    abcd_p = jnp.zeros((B, A_PAD), f32).at[:, :n_abcd].set(abcd.astype(f32))
    w_abcd_p = jnp.zeros((A_PAD, HIDDEN), f32).at[:n_abcd].set(
        params["w_abcd"].astype(f32).T)

    # TODO(synk): backbone stand-ins (GAP + linear stubs); composing
    # stub @ fc.T is exact (bias + relu follow the chain) but only valid
    # while the backbones remain stubs.
    w_cnn_eff = params["w_cnn_stub"].astype(f32) @ params["w_cnn"].astype(f32).T
    w_vit_eff = params["w_vit_stub"].astype(f32) @ params["w_vit"].astype(f32).T
    w_branch = jnp.concatenate([w_cnn_eff, w_vit_eff], axis=1)      # (C, 1024)
    wexp = jnp.tile(w_branch, (b_tile, 1))                          # (rows,1024)
    sel = jnp.repeat(jnp.eye(b_tile, dtype=f32), C, axis=1)         # (b_tile,rows)

    b_all = jnp.stack([params["b_cnn"], params["b_vit"],
                       params["b_abcd"]]).astype(f32)               # (3, 512)

    w_cls = params["w_cls"].astype(f32)                             # (NC, 512)
    w_cls_n = w_cls / jnp.maximum(
        jnp.linalg.norm(w_cls, axis=-1, keepdims=True), EPS)
    w_cls_p = jnp.zeros((HIDDEN, NC_PAD), f32).at[:, :NUM_CLASSES].set(
        (COS_SCALE * w_cls_n).T)

    alpha = jnp.asarray(params["alpha"], f32)
    beta = jnp.asarray(params["beta"], f32)
    coefs = jnp.stack([alpha, beta, 1.0 - alpha - beta]).astype(f32)

    # ---- specs --------------------------------------------------------------
    def _const(shape):
        n = len(shape)
        return pl.BlockSpec(shape, lambda b, h, _n=n: (0,) * _n)

    in_specs = [
        pl.BlockSpec((rows, hw_tile), lambda b, h: (b, h)),         # x
        pl.BlockSpec((b_tile, A_PAD), lambda b, h: (b, 0)),         # abcd
        _const((b_tile, rows)),                                     # sel
        _const((rows, 2 * HIDDEN)),                                 # wexp
        _const((3, HIDDEN)),                                        # biases
        _const((A_PAD, HIDDEN)),                                    # w_abcd
        _const((HIDDEN, NC_PAD)),                                   # w_cls*scale
        pl.BlockSpec(memory_space=pltpu.MemorySpace.SMEM),          # coefs
    ]
    out_spec = pl.BlockSpec((b_tile, NC_PAD), lambda b, h: (b, 0))

    # ---- VMEM budget --------------------------------------------------------
    def _rup(v, m):
        return ((v + m - 1) // m) * m

    x_bytes = 2 * _rup(rows, 8) * _rup(hw_tile, LANE) * x.dtype.itemsize
    small = 0
    for (r, c) in [(b_tile, rows), (rows, 2 * HIDDEN), (3, HIDDEN),
                   (A_PAD, HIDDEN), (HIDDEN, NC_PAD), (b_tile, A_PAD),
                   (b_tile, NC_PAD), (rows, 1)]:
        small += 2 * _rup(r, 8) * _rup(c, LANE) * 4
    vmem_bytes = int(min(max(x_bytes + small + (4 << 20), 24 << 20), 48 << 20))

    out = pl.pallas_call(
        _make_kernel(hw_tile, HW),
        out_shape=jax.ShapeDtypeStruct((B, NC_PAD), jnp.float32),
        grid_spec=pltpu.PrefetchScalarGridSpec(
            num_scalar_prefetch=0,
            grid=grid,
            in_specs=in_specs,
            out_specs=out_spec,
            scratch_shapes=[pltpu.VMEM((rows, 1), jnp.float32)],
        ),
        compiler_params=pltpu.CompilerParams(
            # batch axis "parallel" (v7x 2 TCs); the HW reduction axis must
            # stay last + "arbitrary" (output block revisited across it).
            dimension_semantics=("parallel", "arbitrary"),
            vmem_limit_bytes=vmem_bytes,
        ),
    )(x_flat, abcd_p, sel, wexp, b_all, w_abcd_p, w_cls_p, coefs)

    return out[:, :NUM_CLASSES]


# --------------------------------------------------------------------------
# Deterministic parameter init (nn.Linear weights kept in torch
# (out_features, in_features) layout; stubs replace the pretrained backbones).
# --------------------------------------------------------------------------
def init_params(key, C):
    ks = jax.random.split(key, 8)
    s = 0.05
    return {
        "w_cnn_stub": s * jax.random.normal(ks[0], (C, HIDDEN), jnp.float32),
        "w_vit_stub": s * jax.random.normal(ks[1], (C, VIT_DIM), jnp.float32),
        "w_cnn": s * jax.random.normal(ks[2], (HIDDEN, HIDDEN), jnp.float32),
        "b_cnn": s * jax.random.normal(ks[3], (HIDDEN,), jnp.float32),
        "w_vit": s * jax.random.normal(ks[4], (HIDDEN, VIT_DIM), jnp.float32),
        "b_vit": s * jax.random.normal(ks[5], (HIDDEN,), jnp.float32),
        "w_abcd": s * jax.random.normal(ks[6], (HIDDEN, NUM_ABCD), jnp.float32),
        "b_abcd": jnp.zeros((HIDDEN,), jnp.float32),
        "w_cls": s * jax.random.normal(ks[7], (NUM_CLASSES, HIDDEN),
                                       jnp.float32),
        "alpha": jnp.float32(0.3),
        "beta": jnp.float32(0.3),
    }


# pure-JAX reference of the same math (f32 end to end), sanity check
def reference_forward(x, abcd, params):
    if abcd.ndim == 1:
        abcd = abcd[None, :]
    B, C, H, W = x.shape
    if abcd.shape[0] != B:
        abcd = jnp.broadcast_to(abcd, (B, abcd.shape[1]))
    pooled = jnp.mean(x.reshape(B, C, -1).astype(jnp.float32), axis=-1)
    cnn_feats = pooled @ params["w_cnn_stub"]
    vit_feats = pooled @ params["w_vit_stub"]
    cnn_h = jax.nn.relu(cnn_feats @ params["w_cnn"].T + params["b_cnn"])
    vit_h = jax.nn.relu(vit_feats @ params["w_vit"].T + params["b_vit"])
    abcd_h = jax.nn.relu(abcd @ params["w_abcd"].T + params["b_abcd"])
    a, b = params["alpha"], params["beta"]
    comb = jax.nn.relu(a * cnn_h + b * vit_h + (1.0 - a - b) * abcd_h)
    xn = comb / jnp.maximum(jnp.linalg.norm(comb, axis=-1, keepdims=True), EPS)
    wn = params["w_cls"] / jnp.maximum(
        jnp.linalg.norm(params["w_cls"], axis=-1, keepdims=True), EPS)
    return COS_SCALE * (xn @ wn.T)


if __name__ == "__main__":
    key = jax.random.PRNGKey(0)
    kx, ka, kp = jax.random.split(key, 3)

    B, C, H, W = 2, 4, 16, 16
    x = jax.random.normal(kx, (B, C, H, W), jnp.float32)
    abcd = jax.random.normal(ka, (B, NUM_ABCD), jnp.float32)
    params = init_params(kp, C)

    # hw_tile=128 forces a 2-step HW reduction so the accumulation path
    # (grid=(1, 2), pl.when init / finalize) is exercised at this tiny size.
    out = resnet_cosine_swin_forward(x, abcd, params, hw_tile=128)
    out = jax.block_until_ready(out)

    assert out.shape == (B, NUM_CLASSES), out.shape
    ref = reference_forward(x, abcd, params)
    assert jnp.allclose(out, ref, atol=3e-2, rtol=3e-2), (out, ref)

    print("KERNEL_OK")
</pallas_src>

<mosaic_0001>
module attributes {stable_mosaic.version = 11 : i64} {
  func.func @kernel(%arg0: i32, %arg1: i32, %arg2: memref<8x128xf32, #tpu.memory_space<vmem>>, %arg3: memref<2x128xf32, #tpu.memory_space<vmem>>, %arg4: memref<2x8xf32, #tpu.memory_space<vmem>>, %arg5: memref<8x1024xf32, #tpu.memory_space<vmem>>, %arg6: memref<3x512xf32, #tpu.memory_space<vmem>>, %arg7: memref<128x512xf32, #tpu.memory_space<vmem>>, %arg8: memref<512x128xf32, #tpu.memory_space<vmem>>, %arg9: memref<3xf32, #tpu.memory_space<smem>>, %arg10: memref<2x128xf32, #tpu.memory_space<vmem>>, %arg11: memref<8x1xf32, #tpu.memory_space<vmem>>) attributes {dimension_semantics = [#tpu.dimension_semantics<parallel>, #tpu.dimension_semantics<arbitrary>], iteration_bounds = array<i64: 1, 2>, scalar_prefetch = 0 : i64, scratch_operands = 1 : i64, tpu.core_type = #tpu.core_type<tc>, window_params = [{transform_indices = @transform_0, window_bounds = array<i64: 8, 128>}, {transform_indices = @transform_1, window_bounds = array<i64: 2, 128>}, {pipeline_mode = #tpu.pipeline_mode<synchronous>, transform_indices = @transform_2, window_bounds = array<i64: 2, 8>}, {pipeline_mode = #tpu.pipeline_mode<synchronous>, transform_indices = @transform_3, window_bounds = array<i64: 8, 1024>}, {pipeline_mode = #tpu.pipeline_mode<synchronous>, transform_indices = @transform_4, window_bounds = array<i64: 3, 512>}, {pipeline_mode = #tpu.pipeline_mode<synchronous>, transform_indices = @transform_5, window_bounds = array<i64: 128, 512>}, {pipeline_mode = #tpu.pipeline_mode<synchronous>, transform_indices = @transform_6, window_bounds = array<i64: 512, 128>}, {transform_indices = @transform_7, window_bounds = array<i64: 3>}, {transform_indices = @transform_8, window_bounds = array<i64: 2, 128>}]} {
    %c0_i32 = arith.constant 0 : i32
    %0 = arith.cmpi eq, %arg1, %c0_i32 : i32
    %1 = arith.extui %0 : i1 to i32
    %c0_i32_0 = arith.constant 0 : i32
    %2 = arith.cmpi ne, %1, %c0_i32_0 : i32
    scf.if %2 {
      %cst_7 = arith.constant 0.000000e+00 : f32
      %12 = vector.broadcast %cst_7 : f32 to vector<8x1xf32>
      %c0_8 = arith.constant 0 : index
      %c0_9 = arith.constant 0 : index
      %13 = vector.load %arg11[%c0_8, %c0_9] : memref<8x1xf32, #tpu.memory_space<vmem>>, vector<8x1xf32>
      tpu.vector_store %arg11[%c0_8, %c0_9], %12 {strides = array<i32>} : memref<8x1xf32, #tpu.memory_space<vmem>>, vector<8x1xf32>,
    } else {
    }
    %c0 = arith.constant 0 : index
    %c0_1 = arith.constant 0 : index
    %3 = vector.load %arg2[%c0, %c0_1] : memref<8x128xf32, #tpu.memory_space<vmem>>, vector<8x128xf32>
    %cst = arith.constant dense<0.000000e+00> : vector<8xf32>
    %4 = vector.multi_reduction <add>, %3, %cst [1] : vector<8x128xf32> to vector<8xf32>
    %5 = vector.shape_cast %4 : vector<8xf32> to vector<8x1xf32>
    %c0_2 = arith.constant 0 : index
    %c0_3 = arith.constant 0 : index
    %6 = vector.load %arg11[%c0_2, %c0_3] : memref<8x1xf32, #tpu.memory_space<vmem>>, vector<8x1xf32>
    %7 = arith.addf %6, %5 : vector<8x1xf32>
    %c0_4 = arith.constant 0 : index
    %c0_5 = arith.constant 0 : index
    %8 = vector.load %arg11[%c0_4, %c0_5] : memref<8x1xf32, #tpu.memory_space<vmem>>, vector<8x1xf32>
    tpu.vector_store %arg11[%c0_4, %c0_5], %7 {strides = array<i32>} : memref<8x1xf32, #tpu.memory_space<vmem>>, vector<8x1xf32>,
    %c1_i32 = arith.constant 1 : i32
    %9 = arith.cmpi eq, %arg1, %c1_i32 : i32
    %10 = arith.extui %9 : i1 to i32
    %c0_i32_6 = arith.constant 0 : i32
    %11 = arith.cmpi ne, %10, %c0_i32_6 : i32
    scf.if %11 {
      %c0_7 = arith.constant 0 : index
      %c0_8 = arith.constant 0 : index
      %12 = vector.load %arg11[%c0_7, %c0_8] : memref<8x1xf32, #tpu.memory_space<vmem>>, vector<8x1xf32>
      %cst_9 = arith.constant 3.906250e-03 : f32
      %13 = vector.broadcast %cst_9 : f32 to vector<8x1xf32>
      %14 = arith.mulf %12, %13 : vector<8x1xf32>
      %c0_10 = arith.constant 0 : index
      %c0_11 = arith.constant 0 : index
      %15 = vector.load %arg4[%c0_10, %c0_11] : memref<2x8xf32, #tpu.memory_space<vmem>>, vector<2x8xf32>
      %c0_12 = arith.constant 0 : index
      %c0_13 = arith.constant 0 : index
      %16 = vector.load %arg5[%c0_12, %c0_13] : memref<8x1024xf32, #tpu.memory_space<vmem>>, vector<8x1024xf32>
      %17 = vector.broadcast %14 : vector<8x1xf32> to vector<8x1024xf32>
      %18 = arith.mulf %17, %16 : vector<8x1024xf32>
      %cst_14 = arith.constant dense<0.000000e+00> : vector<2x1024xf32>
      %19 = tpu.matmul %15, %18, %cst_14 {dimension_numbers = #tpu.dot_dimension_numbers<[1], [0], [0], [1], [0, 0, 1, 1], [], []>} : vector<2x8xf32>, vector<8x1024xf32>, vector<2x1024xf32> -> vector<2x1024xf32>
      %20 = vector.extract_strided_slice %19 {offsets = [0, 0], sizes = [2, 512], strides = [1, 1]} : vector<2x1024xf32> to vector<2x512xf32>
      %c0_15 = arith.constant 0 : index
      %c0_16 = arith.constant 0 : index
      %21 = vector.load %arg6[%c0_15, %c0_16] : memref<3x512xf32, #tpu.memory_space<vmem>>, vector<1x512xf32>
      %22 = vector.broadcast %21 : vector<1x512xf32> to vector<2x512xf32>
      %23 = arith.addf %20, %22 : vector<2x512xf32>
      %cst_17 = arith.constant 0.000000e+00 : f32
      %24 = vector.broadcast %cst_17 : f32 to vector<2x512xf32>
      %25 = arith.maximumf %23, %24 : vector<2x512xf32>
      %26 = vector.extract_strided_slice %19 {offsets = [0, 512], sizes = [2, 512], strides = [1, 1]} : vector<2x1024xf32> to vector<2x512xf32>
      %c1 = arith.constant 1 : index
      %c0_18 = arith.constant 0 : index
      %27 = vector.load %arg6[%c1, %c0_18] : memref<3x512xf32, #tpu.memory_space<vmem>>, vector<1x512xf32>
      %28 = vector.broadcast %27 : vector<1x512xf32> to vector<2x512xf32>
      %29 = arith.addf %26, %28 : vector<2x512xf32>
      %cst_19 = arith.constant 0.000000e+00 : f32
      %30 = vector.broadcast %cst_19 : f32 to vector<2x512xf32>
      %31 = arith.maximumf %29, %30 : vector<2x512xf32>
      %c0_20 = arith.constant 0 : index
      %c0_21 = arith.constant 0 : index
      %32 = vector.load %arg3[%c0_20, %c0_21] : memref<2x128xf32, #tpu.memory_space<vmem>>, vector<2x128xf32>
      %c0_22 = arith.constant 0 : index
      %c0_23 = arith.constant 0 : index
      %33 = vector.load %arg7[%c0_22, %c0_23] : memref<128x512xf32, #tpu.memory_space<vmem>>, vector<128x512xf32>
      %cst_24 = arith.constant dense<0.000000e+00> : vector<2x512xf32>
      %34 = tpu.matmul %32, %33, %cst_24 {dimension_numbers = #tpu.dot_dimension_numbers<[1], [0], [0], [1], [0, 0, 1, 1], [], []>} : vector<2x128xf32>, vector<128x512xf32>, vector<2x512xf32> -> vector<2x512xf32>
      %c2 = arith.constant 2 : index
      %c0_25 = arith.constant 0 : index
      %35 = vector.load %arg6[%c2, %c0_25] : memref<3x512xf32, #tpu.memory_space<vmem>>, vector<1x512xf32>
      %36 = vector.broadcast %35 : vector<1x512xf32> to vector<2x512xf32>
      %37 = arith.addf %34, %36 : vector<2x512xf32>
      %cst_26 = arith.constant 0.000000e+00 : f32
      %38 = vector.broadcast %cst_26 : f32 to vector<2x512xf32>
      %39 = arith.maximumf %37, %38 : vector<2x512xf32>
      %c0_27 = arith.constant 0 : index
      %40 = memref.load %arg9[%c0_27] : memref<3xf32, #tpu.memory_space<smem>>
      %c1_28 = arith.constant 1 : index
      %41 = memref.load %arg9[%c1_28] : memref<3xf32, #tpu.memory_space<smem>>
      %c2_29 = arith.constant 2 : index
      %42 = memref.load %arg9[%c2_29] : memref<3xf32, #tpu.memory_space<smem>>
      %43 = vector.broadcast %40 : f32 to vector<2x512xf32>
      %44 = arith.mulf %43, %25 : vector<2x512xf32>
      %45 = vector.broadcast %41 : f32 to vector<2x512xf32>
      %46 = arith.mulf %45, %31 : vector<2x512xf32>
      %47 = arith.addf %44, %46 : vector<2x512xf32>
      %48 = vector.broadcast %42 : f32 to vector<2x512xf32>
      %49 = arith.mulf %48, %39 : vector<2x512xf32>
      %50 = arith.addf %47, %49 : vector<2x512xf32>
      %cst_30 = arith.constant 0.000000e+00 : f32
      %51 = vector.broadcast %cst_30 : f32 to vector<2x512xf32>
      %52 = arith.maximumf %50, %51 : vector<2x512xf32>
      %53 = arith.mulf %52, %52 : vector<2x512xf32>
      %cst_31 = arith.constant dense<0.000000e+00> : vector<2xf32>
      %54 = vector.multi_reduction <add>, %53, %cst_31 [1] : vector<2x512xf32> to vector<2xf32>
      %55 = vector.shape_cast %54 : vector<2xf32> to vector<2x1xf32>
      %cst_32 = arith.constant 1.000000e-24 : f32
      %56 = vector.broadcast %cst_32 : f32 to vector<2x1xf32>
      %57 = arith.maximumf %55, %56 : vector<2x1xf32>
      %58 = math.rsqrt %57 : vector<2x1xf32>
      %59 = vector.broadcast %58 : vector<2x1xf32> to vector<2x512xf32>
      %60 = arith.mulf %52, %59 : vector<2x512xf32>
      %c0_33 = arith.constant 0 : index
      %c0_34 = arith.constant 0 : index
      %61 = vector.load %arg8[%c0_33, %c0_34] : memref<512x128xf32, #tpu.memory_space<vmem>>, vector<512x128xf32>
      %cst_35 = arith.constant dense<0.000000e+00> : vector<2x128xf32>
      %62 = tpu.matmul %60, %61, %cst_35 {dimension_numbers = #tpu.dot_dimension_numbers<[1], [0], [0], [1], [0, 0, 1, 1], [], []>} : vector<2x512xf32>, vector<512x128xf32>, vector<2x128xf32> -> vector<2x128xf32>
      %c0_36 = arith.constant 0 : index
      %c0_37 = arith.constant 0 : index
      %63 = vector.load %arg10[%c0_36, %c0_37] : memref<2x128xf32, #tpu.memory_space<vmem>>, vector<2x128xf32>
      tpu.vector_store %arg10[%c0_36, %c0_37], %62 {strides = array<i32>} : memref<2x128xf32, #tpu.memory_space<vmem>>, vector<2x128xf32>,
    } else {
    }
    return
  }
  func.func @transform_0(%arg0: i32, %arg1: i32) -> (i32, i32) {
    %c0_i32 = arith.constant 0 : i32
    return %arg0, %arg1 : i32, i32
  }
  func.func @transform_1(%arg0: i32, %arg1: i32) -> (i32, i32) {
    %c0_i32 = arith.constant 0 : i32
    %c0_i32_0 = arith.constant 0 : i32
    return %arg0, %c0_i32 : i32, i32
  }
  func.func @transform_2(%arg0: i32, %arg1: i32) -> (i32, i32) {
    %c0_i32 = arith.constant 0 : i32
    %c0_i32_0 = arith.constant 0 : i32
    %c0_i32_1 = arith.constant 0 : i32
    return %c0_i32, %c0_i32_0 : i32, i32
  }
  func.func @transform_3(%arg0: i32, %arg1: i32) -> (i32, i32) {
    %c0_i32 = arith.constant 0 : i32
    %c0_i32_0 = arith.constant 0 : i32
    %c0_i32_1 = arith.constant 0 : i32
    return %c0_i32, %c0_i32_0 : i32, i32
  }
  func.func @transform_4(%arg0: i32, %arg1: i32) -> (i32, i32) {
    %c0_i32 = arith.constant 0 : i32
    %c0_i32_0 = arith.constant 0 : i32
    %c0_i32_1 = arith.constant 0 : i32
    return %c0_i32, %c0_i32_0 : i32, i32
  }
  func.func @transform_5(%arg0: i32, %arg1: i32) -> (i32, i32) {
    %c0_i32 = arith.constant 0 : i32
    %c0_i32_0 = arith.constant 0 : i32
    %c0_i32_1 = arith.constant 0 : i32
    return %c0_i32, %c0_i32_0 : i32, i32
  }
  func.func @transform_6(%arg0: i32, %arg1: i32) -> (i32, i32) {
    %c0_i32 = arith.constant 0 : i32
    %c0_i32_0 = arith.constant 0 : i32
    %c0_i32_1 = arith.constant 0 : i32
    return %c0_i32, %c0_i32_0 : i32, i32
  }
  func.func @transform_7(%arg0: i32, %arg1: i32) -> i32 {
    %c0_i32 = arith.constant 0 : i32
    %c0_i32_0 = arith.constant 0 : i32
    return %c0_i32 : i32
  }
  func.func @transform_8(%arg0: i32, %arg1: i32) -> (i32, i32) {
    %c0_i32 = arith.constant 0 : i32
    %c0_i32_0 = arith.constant 0 : i32
    return %arg0, %c0_i32 : i32, i32
  }
}

</mosaic_0001>

<bundles_post_ra>
// kernel: tpu_custom_call.1
= control target key start
LH: loop header
LB: loop body
LE: loop exit
PB: predicated region body
PF: predicated region fallthrough
CT: control target
= control target key end

     0   :  { %s2421_s0 = inlined_call_operand.hbm [shape: f32[8,256], index: 0, kind: input, shape index: {}]   ;;  %s2422_s1 = inlined_call_operand.vmem [shape: f32[2,128], index: 1, kind: input, shape index: {}]   ;;  %s2423_s2 = inlined_call_operand.vmem [shape: f32[2,8], index: 2, kind: input, shape index: {}]   ;;  %s2424_s3 = inlined_call_operand.hbm [shape: f32[8,1024], index: 3, kind: input, shape index: {}]   ;;  %s2425_s4 = inlined_call_operand.hbm [shape: f32[3,512], index: 4, kind: input, shape index: {}]   ;;  %s2426_s5 = inlined_call_operand.hbm [shape: f32[128,512], index: 5, kind: input, shape index: {}]   ;;  %s2427_s6 = inlined_call_operand.hbm [shape: f32[512,128], index: 6, kind: input, shape index: {}]   ;;  %s2428_s7 = inlined_call_operand.vmem [shape: f32[3], index: 7, kind: input, shape index: {}]   ;;  %s2429_s8 = inlined_call_operand.hbm [shape: f32[2,128], index: 8, kind: output, shape index: {}]  }
   0x1   :  { %2434 = sst [smem:[#allocation20_spill]] %s2424_s3 }
   0x2   :  { %13 = vsyncpa [#allocation4], 0 }
   0x3   :  { %15 = vsyncpa [#allocation4 + $0x1], 0 }
   0x4   :  { %16 = vsyncpa [#allocation8], 0 }
   0x5   :  { %17 = vsyncpa [#allocation11], 0 }
   0x6   :  { %18 = vsyncpa [#allocation6], 0 }
   0x7   :  { %19 = vsyncpa [#allocation5], 0  ;;  %s2092_s27 = smov 0   ;;  %s2094_s28 = smov 0  }
   0x8   :  { %s2096_s29 = smov 0   ;;  %s2098_s30 = smov 0  }
   0x9   :  { %s2100_s9 = smov 0   ;;  %s2102_s10 = smov 0  }
   0xa LB: > { %s2433_s11 = sadd.s32 4294967295, %s2031_s10   ;;  %p1432_p0 = scmp.ge.s32.totalorder %s2031_s10, 1  ;;  %s2031_s10 = sphi %s2102_s10, %s25_s10   ;;  %s2027_s9 = sphi %s2100_s9, %s2452_s9   ;;  %s2023_s30 = sphi %s2098_s30, %s2451_s30   ;;  %s2019_s29 = sphi %s2096_s29, %s2450_s29   ;;  %s2015_s28 = sphi %s2094_s28, %s2449_s28   ;;  %s2011_s27 = sphi %s2092_s27, %s2448_s27  }
   0xb   : > { %p2126_p1 = scmp.eq.s32.totalorder %s2433_s11, 0  ;;  %p248_p2 = scmp.lt.s32.totalorder %s2031_s10, 3 }
   0xc   : > { %s2033_s14 = smov [#allocation7]   ;;  %s2034_s16 = smov [#allocation10]  }
   0xd   : > { %s2435_s12 = scalar_select %p2126_p1, 1, 0 }
   0xe   : > { %p2131_p3 = pnand %p1432_p0, %p248_p2  ;;  %s271_s15 = sshll.u32 %s2033_s14, 4  ;;  %s272_s15 = int_to_ptr.vmem [resolvable:$true] %s271_s15 }
   0xf   : > { %s292_s17 = sshll.u32 %s2034_s16, 4  ;;  %s2035_s19 = smov [#allocation9]   ;;  %s2143_s17 = int_to_ptr.vmem [resolvable:$true] %s292_s17 }
  0x10   : > { %s2436_s13 = scalar_select %p2131_p3, 1, 0 }
  0x11   : > { %p1685_p4 = pneg %p2131_p3  ;;  %s2145_s20 = sshll.u32 %s2035_s19, 4  ;;  %s283_s20 = int_to_ptr.vmem [resolvable:$true] %s2145_s20 }
  0x12   : > { %s2438_s3 = sld [smem:[#allocation20_spill]] }
  0x13   : > { %p2139_p5 = pnand %p1685_p4, %p2126_p1 }
  0x15   : > { %p2155_p7 = pneg %p2139_p5 }
  0x18   : > { %s1782_s23 = scalar_lea.hbm %s2438_s3, 1024 }
  0x19   : > { %p1783_p6 = scmp.ne.s32.totalorder %s2438_s3, %s1782_s23  ;;  %p1789_p10 = scmp.lt.u32.totalorder %s1782_s23, %s2438_s3 }
  0x1b   : > { %p1785_p8 = pnand %p2155_p7, %p1783_p6 }
  0x1d   : > { %p1786_p9 = pneg %p1785_p8 }
  0x1f   : > { %p1791_p11 = pnand %p1789_p10, %p1786_p9 }
  0x21   : > { %1794 = shalt.err (!%p1791_p11)
}
  0x22   : > { %s1795_s19 = scalar_lea.vmem %s272_s15, 1024  ;;  %p1803_p2 = scmp.lt.s32.totalorder %s272_s15, %s272_s15 }
  0x23   : > { %p1796_p12 = scmp.ne.s32.totalorder %s272_s15, %s1795_s19  ;;  %p1804_p4 = scmp.lt.s32.totalorder %s1795_s19, %s1795_s19 }
  0x25   : > { %p1798_p13 = pnand %p1796_p12, %p2155_p7  ;;  %p1805_p3 = por %p1804_p4, %p1803_p2 }
  0x27   : > { %p1799_p0 = pneg %p1798_p13 }
  0x29   : > { %p1806_p1 = pnand %p1805_p3, %p1799_p0 }
  0x2b   : > { %1809 = shalt.err (!%p1806_p1)
}
  0x2c   : > { %1688 = dma.hbm_to_vmem [thread:$0]  (!%p2139_p5), %s2438_s3, 1024, %s272_s15, [#allocation8]  }
  0x2d   : > { %s1810_s25 = scalar_lea.hbm %s2426_s5, 8192 }
  0x2e   : > { %p1811_p6 = scmp.ne.s32.totalorder %s2426_s5, %s1810_s25  ;;  %p1817_p1 = scmp.lt.u32.totalorder %s1810_s25, %s2426_s5 }
  0x30   : > { %p1813_p8 = pnand %p1811_p6, %p2155_p7 }
  0x32   : > { %p1814_p9 = pneg %p1813_p8 }
  0x34   : > { %p1819_p3 = pnand %p1817_p1, %p1814_p9 }
  0x36   : > { %1822 = shalt.err (!%p1819_p3)
}
  0x37   : > { %s1823_s15 = scalar_lea.vmem %s2143_s17, 8192  ;;  %p1831_p13 = scmp.lt.s32.totalorder %s2143_s17, %s2143_s17 }
  0x38   : > { %p1824_p10 = scmp.ne.s32.totalorder %s2143_s17, %s1823_s15  ;;  %p1832_p0 = scmp.lt.s32.totalorder %s1823_s15, %s1823_s15 }
  0x3a   : > { %p1826_p11 = pnand %p1824_p10, %p2155_p7  ;;  %p1833_p2 = por %p1832_p0, %p1831_p13 }
  0x3c   : > { %p1827_p12 = pneg %p1826_p11 }
  0x3e   : > { %p1834_p4 = pnand %p1833_p2, %p1827_p12 }
  0x40   : > { %1837 = shalt.err (!%p1834_p4)
}
  0x41   : > { %s2036_s21 = smov 512   ;;  %s2037_s11 = smov 32  }
  0x42   : > { %1694 = dma.hbm_to_vmem [thread:$0]  (!%p2139_p5), %s2426_s5, 8192, %s2143_s17, [#allocation11], %s2036_s21, %s2036_s21, %s2037_s11  }
  0x43   : > { %s1838_s14 = scalar_lea.hbm %s2425_s4, 256 }
  0x44   : > { %p1839_p6 = scmp.ne.s32.totalorder %s2425_s4, %s1838_s14  ;;  %p1845_p1 = scmp.lt.u32.totalorder %s1838_s14, %s2425_s4 }
  0x46   : > { %p1841_p8 = pnand %p1839_p6, %p2155_p7 }
  0x48   : > { %p1842_p9 = pneg %p1841_p8 }
  0x4a   : > { %p1847_p3 = pnand %p1845_p1, %p1842_p9 }
  0x4c   : > { %1850 = shalt.err (!%p1847_p3)
}
  0x4d   : > { %s1851_s22 = scalar_lea.vmem %s283_s20, 256  ;;  %p1859_p13 = scmp.lt.s32.totalorder %s283_s20, %s283_s20 }
  0x4e   : > { %p1852_p10 = scmp.ne.s32.totalorder %s283_s20, %s1851_s22  ;;  %p1860_p0 = scmp.lt.s32.totalorder %s1851_s22, %s1851_s22 }
  0x50   : > { %p1854_p11 = pnand %p1852_p10, %p2155_p7  ;;  %p1861_p2 = por %p1860_p0, %p1859_p13 }
  0x52   : > { %p1855_p12 = pneg %p1854_p11 }
  0x54   : > { %p1862_p4 = pnand %p1861_p2, %p1855_p12 }
  0x56   : > { %1865 = shalt.err (!%p1862_p4)
}
  0x57   : > { %1691 = dma.hbm_to_vmem [thread:$0]  (!%p2139_p5), %s2425_s4, 256, %s283_s20, [#allocation8]  }
  0x58   : > { %s2038_s3 = smov [#allocation12]   ;;  %s1866_s25 = scalar_lea.hbm %s2427_s6, 8192 }
  0x59   : > { %s305_s11 = sshll.u32 %s2038_s3, 4  ;;  %p1867_p6 = scmp.ne.s32.totalorder %s2427_s6, %s1866_s25  ;;  %s306_s11 = int_to_ptr.vmem [resolvable:$true] %s305_s11 }
  0x5a   : > { %p1873_p1 = scmp.lt.u32.totalorder %s1866_s25, %s2427_s6 }
  0x5b   : > { %p1869_p8 = pnand %p1867_p6, %p2155_p7 }
  0x5d   : > { %p1870_p9 = pneg %p1869_p8 }
  0x5f   : > { %p1875_p3 = pnand %p1873_p1, %p1870_p9 }
  0x61   : > { %1878 = shalt.err (!%p1875_p3)
}
  0x62   : > { %s1879_s20 = scalar_lea.vmem %s306_s11, 8192  ;;  %p1887_p13 = scmp.lt.s32.totalorder %s306_s11, %s306_s11 }
  0x63   : > { %p1880_p10 = scmp.ne.s32.totalorder %s306_s11, %s1879_s20  ;;  %p1888_p0 = scmp.lt.s32.totalorder %s1879_s20, %s1879_s20 }
  0x65   : > { %p1882_p11 = pnand %p1880_p10, %p2155_p7  ;;  %p1889_p2 = por %p1888_p0, %p1887_p13 }
  0x67   : > { %p1883_p12 = pneg %p1882_p11 }
  0x69   : > { %p1890_p4 = pnand %p1889_p2, %p1883_p12 }
  0x6b   : > { %1893 = shalt.err (!%p1890_p4)
}
  0x6c   : > { %s2039_s22 = smov 128   ;;  %s2040_s17 = smov 8  }
  0x6d   : > { %1697 = dma.hbm_to_vmem [thread:$0]  (!%p2139_p5), %s2427_s6, 8192, %s306_s11, [#allocation11], %s2039_s22, %s2039_s22, %s2040_s17  }
  0x6e   : > { %s319_s25 = sshll.u32 %s2428_s7, 4  ;;  %s320_s25 = int_to_ptr.vmem [resolvable:$true] %s319_s25 }
  0x6f   : > { %s1894_s14 = scalar_lea.vmem %s320_s25, 16  ;;  %p1902_p1 = scmp.lt.s32.totalorder %s320_s25, %s320_s25 }
  0x70   : > { %p1895_p6 = scmp.ne.s32.totalorder %s320_s25, %s1894_s14  ;;  %p1903_p3 = scmp.lt.s32.totalorder %s1894_s14, %s1894_s14 }
  0x72   : > { %p1897_p8 = pnand %p1895_p6, %p2155_p7  ;;  %p1904_p10 = por %p1903_p3, %p1902_p1 }
  0x74   : > { %p1898_p9 = pneg %p1897_p8 }
  0x76   : > { %p1905_p11 = pnand %p1904_p10, %p1898_p9 }
  0x78   : > { %1908 = shalt.err (!%p1905_p11)
}
  0x79   : > { %s2041_s16 = smov [#allocation13]   ;;  %s34_s26 = sadd.s32 1, %s2027_s9 }
  0x7a   : > { %1700 = dma.vmem_to_smem (!%p2139_p5), %s320_s25, 16, %s2041_s16, [#allocation6]  }
  0x7b   : > { %p35_p7 = scmp.ge.s32.totalorder %s34_s26, 2  ;;  %s46_s11 = sadd.s32 1, %s2019_s29 }
  0x7c   : > { %p53_p12 = scmp.ne.s32.totalorder %s2019_s29, %s2015_s28  ;;  %p54_p13 = scmp.eq.s32.totalorder %s2031_s10, 0 }
  0x7d   : > { %s2454_s26 = smov (%p35_p7, %s34_s26), 0  ;;  %p59_p2 = scmp.ne.s32.totalorder %s2015_s28, %s2011_s27 }
  0x7e   : > { %p2245_p0 = por %p54_p13, %p53_p12  ;;  %s42_s19 = ssub.s32 %s2027_s9, %s2454_s26 }
  0x7f   : > { %p1710_p4 = scmp.lt.s32.totalorder %s2031_s10, 2  ;;  %p44_p6 = scmp.eq.s32.totalorder %s42_s19, 0 }
  0x80   : > { %p2441_p8 = scmp.ne.s32.totalorder %s2435_s12, 0  ;;  %s330_s20 = sand.u32 1, %s2019_s29  }
  0x81   : > { %s1441_s22 = sshll.u32 %s2027_s9, 7  ;;  %s1440_s21 = sshll.u32 %s330_s20, 3 }
  0x82   : > { %p2256_p9 = por %p2441_p8, %p59_p2  ;;  %s2268_s24 = scalar_lea.hbm %s2421_s0, %s1441_s22 }
  0x83   : > { %s2263_s17 = scalar_select %p44_p6, %s2019_s29, %s46_s11  }
  0x84   : > { %s334_s27 = scalar_lea.vmem [#allocation3], %s1440_s21  ;;  %p2272_p5 = pnand %p1710_p4, %p2245_p0 }
  0x85   : > { %s343_s25 = sshll.u32 %s334_s27, 4  ;;  %s331_s16 = scalar_lea.sflag [#allocation4], %s330_s20  ;;  %s2276_s25 = int_to_ptr.vmem [resolvable:$true] %s343_s25 }
  0x86   : > { %s1909_s11 = scalar_lea.hbm %s2268_s24, 128  ;;  %p1911_p3 = pneg %p2272_p5 }
  0x87   : > { %p1910_p1 = scmp.ne.s32.totalorder %s2268_s24, %s1909_s11  ;;  %s1914_s18 = scalar_lea.hbm %s2421_s0, 256 }
  0x88   : > { %p1915_p7 = scmp.lt.u32.totalorder %s2268_s24, %s2421_s0  ;;  %p1916_p12 = scmp.lt.u32.totalorder %s1914_s18, %s1909_s11 }
  0x89   : > { %p1912_p10 = pnand %p1911_p3, %p1910_p1  ;;  %p1918_p0 = scmp.lt.u32.totalorder %s1909_s11, %s2268_s24 }
  0x8a   : > { %p1917_p13 = por %p1916_p12, %p1915_p7 }
  0x8b   : > { %p1913_p11 = pneg %p1912_p10 }
  0x8c   : > { %p1919_p2 = por %p1918_p0, %p1917_p13 }
  0x8e   : > { %p1920_p4 = pnand %p1919_p2, %p1913_p11 }
  0x90   : > { %1923 = shalt.err (!%p1920_p4)
}
  0x91   : > { %s1924_s20 = scalar_lea.vmem %s2276_s25, 128  ;;  %s2042_s23 = smov [#allocation3]  }
  0x92   : > { %p1925_p6 = scmp.ne.s32.totalorder %s2276_s25, %s1924_s20  ;;  %s1929_s27 = sshll.u32 %s2042_s23, 4  ;;  %s1930_s27 = int_to_ptr.vmem [resolvable:$false] %s1929_s27 }
  0x93   : > { %s1931_s19 = scalar_lea.vmem %s1930_s27, 256  ;;  %p1932_p10 = scmp.lt.s32.totalorder %s2276_s25, %s1930_s27 }
  0x94   : > { %p1927_p8 = pnand %p1925_p6, %p1911_p3  ;;  %p1933_p7 = scmp.lt.s32.totalorder %s1931_s19, %s1924_s20 }
  0x96   : > { %p1928_p1 = pneg %p1927_p8  ;;  %p1934_p12 = por %p1933_p7, %p1932_p10 }
  0x98   : > { %p1935_p13 = pnand %p1934_p12, %p1928_p1 }
  0x9a   : > { %1938 = shalt.err (!%p1935_p13)
}
  0x9b   : > { %1704 = dma.hbm_to_vmem [thread:$0]  (!%p2272_p5), %s2268_s24, 128, %s2276_s25, %s331_s16  }
  0x9c   : > { %p2444_p11 = scmp.ne.s32.totalorder %s2436_s13, 0 }
  0x9d   : > { %s354_s11 = sand.u32 (!%p2444_p11), 1, %s2015_s28  }
  0x9e   : > { %352 = sbr.rel (%p2444_p11) target bundleno = 1141 (0x475), region = 52  ;;  %s1443_s22 = sshll.u32 (!%p2444_p11), %s354_s11, 3 }
  0x9f   : > { %s355_s18 = scalar_lea.sflag (!%p2444_p11), [#allocation4], %s354_s11  ;;  %s358_s21 = scalar_lea.vmem (!%p2444_p11), [#allocation3], %s1443_s22 }
  0xa5   : > { %1990 = dma.done.wait (%p2256_p9), %s355_s18, 128  }
  0xa6   : > { %1992 = vsyncadd (%p2256_p9), %s355_s18, 4294967168  ;;  %p2445_p3 = scmp.ne.s32.totalorder %s2435_s12, 0 }
  0xa8   : > { %1994 = dma.done.wait (%p2445_p3), [#allocation8], 1280  }
  0xa9   : > { %1996 = vsyncadd (%p2445_p3), [#allocation8], 4294966016 }
  0xaa   : > { %1998 = dma.done.wait (%p2445_p3), [#allocation11], 16384  }
  0xab   : > { %2000 = vsyncadd (%p2445_p3), [#allocation11], 4294950912 }
  0xac   : > { %2002 = dma.done.wait (%p2445_p3), [#allocation6], 16  }
  0xad   : > { %2004 = vsyncadd (%p2445_p3), [#allocation6], 4294967280 }
  0xae   : > { %383 = sfence }
  0xaf   : > { %p1449_p9 = scmp.ne.s32.totalorder %s2023_s30, 0 }
  0xb0   : > { %vm419_vm0 = vcmask (!%p1449_p9), 7168   ;;  %v2043_v0 = vmov (!%p1449_p9), 0.0  }
  0xb1   : > { %418 = sbr.rel (%p1449_p9) target bundleno = 184 (0xb8), region = 80  ;;  %420 = vst.msk [vmem:[#allocation2] sm:$0xff] (!%p1449_p9), %vm419_vm0, %v2043_v0 }
  0xb8 PF: > { %v421_v1 = vld [vmem:[%s358_s21] sm:$0xff]  ;;  %v424_v2 = vld [vmem:[#allocation2] sm:$0xff]  ;;  %vm426_vm1 = vcmask 7168   ;;  %p1450_p5 = scmp.ne.s32.totalorder %s2023_s30, 1 }
  0xb9   : > { %422 = vadd.xlane.f32.xlu0 %v421_v1  ;;  %v2044_v6 = vmov (!%p1450_p5), 0   ;;  %v2045_v8 = vmov (!%p1450_p5), 0.0   ;;  %v436_v9 = vld [vmem:[#allocation7 + $0x8] sm:$0xff] (!%p1450_p5)  ;;  %v438_v10 = vld [vmem:[#allocation7 + $0x18] sm:$0xff] (!%p1450_p5)  ;;  %v435_v11 = vld [vmem:[#allocation7] sm:$0xff] (!%p1450_p5)  ;;  %vm456_vm2 = vcmask (!%p1450_p5), 64512  }
  0xba   : > { %1779 = vset.pattern.permute.xlu0 (!%p1450_p5), %v2044_v6  ;;  %524 = vmatprep.mubr.f32.mxu0 (!%p1450_p5), %v2045_v8  ;;  %v437_v12 = vld [vmem:[#allocation7 + $0x10] sm:$0xff] (!%p1450_p5)  ;;  %v440_v14 = vld [vmem:[#allocation7 + $0x28] sm:$0xff] (!%p1450_p5)  ;;  %v442_v15 = vld [vmem:[#allocation7 + $0x38] sm:$0xff] (!%p1450_p5)  ;;  %s1039_s24 = sld [smem:[#allocation13]] (!%p1450_p5)  ;;  %s1455_s25 = sld [smem:[#allocation13 + $0x1]] (!%p1450_p5)  ;;  %vm1073_vm3 = vcmask (!%p1450_p5), 1041408  }
  0xbb   : > { %595 = vmatprep.mubr.f32.mxu1 (!%p1450_p5), %v2045_v8  ;;  %v439_v16 = vld [vmem:[#allocation7 + $0x20] sm:$0xff] (!%p1450_p5)  ;;  %v441_v21 = vld [vmem:[#allocation7 + $0x30] sm:$0xff] (!%p1450_p5)  ;;  %v807_v22 = vld [vmem:[#allocation10 + $0x8] sm:$0xff] (!%p1450_p5)  ;;  %s1456_s14 = sld [smem:[#allocation13 + $0x2]] (!%p1450_p5) }
  0xbc   : > { %v811_v23 = vld [vmem:[#allocation10 + $0x28] sm:$0xff] (!%p1450_p5)  ;;  %v434_v24 = vld [vmem:[%s2423_s2] sm:$0x3] (!%p1450_p5)  ;;  %v806_v27 = vld [vmem:[#allocation10] sm:$0xff] (!%p1450_p5) }
  0xbd   : > { %v809_v25 = vld [vmem:[#allocation10 + $0x18] sm:$0xff] (!%p1450_p5)  ;;  %v810_v28 = vld [vmem:[#allocation10 + $0x20] sm:$0xff] (!%p1450_p5)  ;;  %v1531_v31 = vpack.c.bf16 (!%p1450_p5), %v811_v23, %v807_v22  ;;  %v808_v32 = vld [vmem:[#allocation10 + $0x10] sm:$0xff] (!%p1450_p5) }
  0xbe   : > { %v813_v26 = vld [vmem:[#allocation10 + $0x38] sm:$0xff] (!%p1450_p5)  ;;  %v812_v33 = vld [vmem:[#allocation10 + $0x30] sm:$0xff] (!%p1450_p5)  ;;  %v815_v34 = vld [vmem:[#allocation10 + $0x48] sm:$0xff] (!%p1450_p5)  ;;  %v1533_v41 = vpack.c.bf16 (!%p1450_p5), %v810_v28, %v806_v27 }
  0xbf   : > { %v1563_v37 = vpack.c.bf16 (!%p1450_p5), %v813_v26, %v809_v25  ;;  %v819_v38 = vld [vmem:[#allocation10 + $0x68] sm:$0xff] (!%p1450_p5)  ;;  %v817_v39 = vld [vmem:[#allocation10 + $0x58] sm:$0xff] (!%p1450_p5)  ;;  %v1565_v42 = vpack.c.bf16 (!%p1450_p5), %v812_v33, %v808_v32  ;;  %v814_v43 = vld [vmem:[#allocation10 + $0x40] sm:$0xff] (!%p1450_p5) }
  0xc0   : > { %v821_v40 = vld [vmem:[#allocation10 + $0x78] sm:$0xff] (!%p1450_p5)  ;;  %v818_v44 = vld [vmem:[#allocation10 + $0x60] sm:$0xff] (!%p1450_p5)  ;;  %v1535_v45 = vpack.c.bf16 (!%p1450_p5), %v819_v38, %v815_v34  ;;  %v816_v47 = vld [vmem:[#allocation10 + $0x50] sm:$0xff] (!%p1450_p5) }
  0xc1   : > { %v1567_v46 = vpack.c.bf16 (!%p1450_p5), %v821_v40, %v817_v39  ;;  %v820_v48 = vld [vmem:[#allocation10 + $0x70] sm:$0xff] (!%p1450_p5)  ;;  %v823_v49 = vld [vmem:[#allocation10 + $0x88] sm:$0xff] (!%p1450_p5)  ;;  %v825_v51 = vld [vmem:[#allocation10 + $0x98] sm:$0xff] (!%p1450_p5)  ;;  %v1537_v53 = vpack.c.bf16 (!%p1450_p5), %v818_v44, %v814_v43 }
  0xc2   : > { %v827_v50 = vld [vmem:[#allocation10 + $0xa8] sm:$0xff] (!%p1450_p5)  ;;  %v829_v52 = vld [vmem:[#allocation10 + $0xb8] sm:$0xff] (!%p1450_p5)  ;;  %v1569_v54 = vpack.c.bf16 (!%p1450_p5), %v820_v48, %v816_v47  ;;  %v822_v55 = vld [vmem:[#allocation10 + $0x80] sm:$0xff] (!%p1450_p5) }
  0xc3   : > { %v826_v56 = vld [vmem:[#allocation10 + $0xa0] sm:$0xff] (!%p1450_p5)  ;;  %v1539_v57 = vpack.c.bf16 (!%p1450_p5), %v827_v50, %v823_v49  ;;  %v1571_v58 = vpack.c.bf16 (!%p1450_p5), %v829_v52, %v825_v51  ;;  %v824_v59 = vld [vmem:[#allocation10 + $0x90] sm:$0xff] (!%p1450_p5)  ;;  %v831_v61 = vld [vmem:[#allocation10 + $0xc8] sm:$0xff] (!%p1450_p5) }
  0xc4   : > { %v828_v60 = vld [vmem:[#allocation10 + $0xb0] sm:$0xff] (!%p1450_p5)  ;;  %v835_v62 = vld [vmem:[#allocation10 + $0xe8] sm:$0xff] (!%p1450_p5)  ;;  %v833_v63 = vld [vmem:[#allocation10 + $0xd8] sm:$0xff] (!%p1450_p5)  ;;  %v1541_v1 = vpack.c.bf16 (!%p1450_p5), %v826_v56, %v822_v55 }
  0xc5   : > { %v837_v0 = vld [vmem:[#allocation10 + $0xf8] sm:$0xff] (!%p1450_p5)  ;;  %v851_v22 = vld [vmem:[#allocation10 + $0x168] sm:$0xff] (!%p1450_p5)  ;;  %v846_v27 = vld [vmem:[#allocation10 + $0x140] sm:$0xff] (!%p1450_p5) }
  0xc6   : > { %v1575_v6 = vpack.c.bf16 (!%p1450_p5), %v837_v0, %v833_v63  ;;  %v849_v23 = vld [vmem:[#allocation10 + $0x158] sm:$0xff] (!%p1450_p5)  ;;  %v850_v28 = vld [vmem:[#allocation10 + $0x160] sm:$0xff] (!%p1450_p5)  ;;  %v852_v32 = vld [vmem:[#allocation10 + $0x170] sm:$0xff] (!%p1450_p5) }
  0xc7   : > { %v855_v33 = vld [vmem:[#allocation10 + $0x188] sm:$0xff] (!%p1450_p5)  ;;  %v854_v39 = vld [vmem:[#allocation10 + $0x180] sm:$0xff] (!%p1450_p5)  ;;  %v856_v43 = vld [vmem:[#allocation10 + $0x190] sm:$0xff] (!%p1450_p5) }
  0xc8   : > { %v859_v34 = vld [vmem:[#allocation10 + $0x1a8] sm:$0xff] (!%p1450_p5)  ;;  %v858_v40 = vld [vmem:[#allocation10 + $0x1a0] sm:$0xff] (!%p1450_p5)  ;;  %v860_v44 = vld [vmem:[#allocation10 + $0x1b0] sm:$0xff] (!%p1450_p5) }
  0xc9   : > { %v865_v47 = vld [vmem:[#allocation10 + $0x1d8] sm:$0xff] (!%p1450_p5)  ;;  %v1557_v49 = vpack.c.bf16 (!%p1450_p5), %v858_v40, %v854_v39  ;;  %v1589_v50 = vpack.c.bf16 (!%p1450_p5), %v860_v44, %v856_v43  ;;  %v862_v51 = vld [vmem:[#allocation10 + $0x1c0] sm:$0xff] (!%p1450_p5)  ;;  %v864_v55 = vld [vmem:[#allocation10 + $0x1d0] sm:$0xff] (!%p1450_p5)  ;;  %v746_v44 = vlaneseq (!%p1450_p5) }
  0xca   : > { %v869_v48 = vld [vmem:[#allocation10 + $0x1f8] sm:$0xff] (!%p1450_p5)  ;;  %v868_v56 = vld [vmem:[#allocation10 + $0x1f0] sm:$0xff] (!%p1450_p5)  ;;  %v1138_v0 = vld [vmem:[#allocation12 + $0x188] sm:$0xff] (!%p1450_p5) }
  0xcb   : > { %v1127_v40 = vld [vmem:[#allocation12 + $0x130] sm:$0xff] (!%p1450_p5) }
 0x143   : > { %431 = sbr.rel (%p1450_p5) target bundleno = 1116 (0x45c), region = 84 }
 0x146   : > { %v423_v3 = vpop.xlane.xlu0 %422 }
 0x147   : > { %v425_v4 = vadd.f32 %v424_v2, %v423_v3  ;;  %v1573_v2 = vpack.c.bf16 (!%p1450_p5), %v828_v60, %v824_v59  ;;  %v830_v3 = vld [vmem:[#allocation10 + $0xc0] sm:$0xff] (!%p1450_p5)  ;;  %v805_v59 = vld [vmem:[%s2422_s1] sm:$0x3] (!%p1450_p5) }
 0x148   : > { %v1105_v60 = vld [vmem:[#allocation12 + $0x80] sm:$0xff] (!%p1450_p5) }
 0x149   : > { %427 = vst.msk [vmem:[#allocation2] sm:$0xff] %vm426_vm1, %v425_v4  ;;  %v834_v4 = vld [vmem:[#allocation10 + $0xe0] sm:$0xff] (!%p1450_p5) }
 0x150   : > { %v432_v5 = vld [vmem:[#allocation2] sm:$0xff] }
 0x151   : > { %v433_v7 = vmul.f32 0.00390625, %v432_v5  ;;  %v1543_v5 = vpack.c.bf16 %v835_v62, %v831_v61  ;;  %v1106_v61 = vld [vmem:[#allocation12 + $0x88] sm:$0xff]  ;;  %v1137_v62 = vld [vmem:[#allocation12 + $0x180] sm:$0xff] }
 0x152   : > { %v1595_v63 = vpack.c.bf16 %v1106_v61, %v1105_v60 }
 0x153   : > { %445 = vperm.xlu0 %1779, %v433_v7   ;;  %v832_v7 = vld [vmem:[#allocation10 + $0xd0] sm:$0xff] }
 0x1d2   : > { %v446_v13 = vpop.permute.xlu0 %445 }
 0x1d3   : > { %v449_v17 = vmul.f32 %v446_v13, %v436_v9  ;;  %v451_v18 = vmul.f32 %v446_v13, %v438_v10  ;;  %v448_v19 = vmul.f32 %v446_v13, %v435_v11  ;;  %v450_v20 = vmul.f32 %v446_v13, %v437_v12  ;;  %v836_v9 = vld [vmem:[#allocation10 + $0xf0] sm:$0xff]  ;;  %v839_v10 = vld [vmem:[#allocation10 + $0x108] sm:$0xff]  ;;  %v841_v12 = vld [vmem:[#allocation10 + $0x118] sm:$0xff] }
 0x1d4   : > { %v453_v29 = vmul.f32 %v446_v13, %v440_v14  ;;  %v455_v30 = vmul.f32 %v446_v13, %v442_v15  ;;  %v452_v35 = vmul.f32 %v446_v13, %v439_v16  ;;  %v454_v36 = vmul.f32 %v446_v13, %v441_v21  ;;  %v843_v11 = vld [vmem:[#allocation10 + $0x128] sm:$0xff]  ;;  %v845_v13 = vld [vmem:[#allocation10 + $0x138] sm:$0xff]  ;;  %v838_v15 = vld [vmem:[#allocation10 + $0x100] sm:$0xff] }
 0x1d5   : > { %460 = vmatprep.subr.mxu0 %v449_v17  ;;  %531 = vmatprep.subr.mxu1 %v451_v18  ;;  %v1545_v14 = vpack.c.bf16 %v834_v4, %v830_v3  ;;  %v842_v16 = vld [vmem:[#allocation10 + $0x120] sm:$0xff]  ;;  %v1547_v17 = vpack.c.bf16 %v843_v11, %v839_v10  ;;  %v1579_v18 = vpack.c.bf16 %v845_v13, %v841_v12  ;;  %v847_v21 = vld [vmem:[#allocation10 + $0x148] sm:$0xff]  ;;  %v1108_v10 = vld [vmem:[#allocation12 + $0x98] sm:$0xff] }
 0x1d6   : > { %461 = vmatpush1.msra.mxu0 %v448_v19  ;;  %532 = vmatpush1.msra.mxu1 %v450_v20  ;;  %v840_v19 = vld [vmem:[#allocation10 + $0x110] sm:$0xff]  ;;  %v1549_v25 = vpack.c.bf16 %v842_v16, %v838_v15  ;;  %v1627_v3 = vpack.c.bf16 %v1138_v0, %v1137_v62  ;;  %v1140_v12 = vld [vmem:[#allocation12 + $0x198] sm:$0xff] }
 0x1d7   : > { %1451 = vmatmul.mubr.msk.f32.vlgmr.msra.gmra.mrb[0].mxu0 %vm456_vm2, %v434_v24  ;;  %1452 = vmatmul.mubr.msk.f32.vlgmr.msra.gmra.mrb[0].mxu1 %vm456_vm2, %v434_v24  ;;  %v844_v20 = vld [vmem:[#allocation10 + $0x130] sm:$0xff]  ;;  %v1092_v15 = vld [vmem:[#allocation12 + $0x18] sm:$0xff] }
 0x1d8   : > { %602 = vmatprep.subr.mxu0 %v453_v29  ;;  %673 = vmatprep.subr.mxu1 %v455_v30  ;;  %v1581_v26 = vpack.c.bf16 %v844_v20, %v840_v19  ;;  %v1551_v29 = vpack.c.bf16 %v851_v22, %v847_v21  ;;  %v1139_v11 = vld [vmem:[#allocation12 + $0x190] sm:$0xff]  ;;  %v1109_v19 = vld [vmem:[#allocation12 + $0xa0] sm:$0xff]  ;;  %v1110_v20 = vld [vmem:[#allocation12 + $0xa8] sm:$0xff] }
 0x1d9   : > { %603 = vmatpush1.msra.mxu0 %v452_v35  ;;  %674 = vmatpush1.msra.mxu1 %v454_v36  ;;  %v857_v35 = vld [vmem:[#allocation10 + $0x198] sm:$0xff]  ;;  %v1123_v16 = vld [vmem:[#allocation12 + $0x110] sm:$0xff]  ;;  %v1603_v22 = vpack.c.bf16 %v1110_v20, %v1109_v19 }
 0x1da   : > { %666 = vmatprep.mubr.f32.mxu0 %v2045_v8  ;;  %737 = vmatprep.mubr.f32.mxu1 %v2045_v8  ;;  %v861_v36 = vld [vmem:[#allocation10 + $0x1b8] sm:$0xff] }
 0x1db   : > { %1532 = vmatprep.subr.bf16.mxu0 %v1531_v31  ;;  %1564 = vmatprep.subr.bf16.mxu1 %v1563_v37  ;;  %v848_v31 = vld [vmem:[#allocation10 + $0x150] sm:$0xff]  ;;  %v1553_v37 = vpack.c.bf16 %v850_v28, %v846_v27  ;;  %v1094_v27 = vld [vmem:[#allocation12 + $0x28] sm:$0xff]  ;;  %v1125_v28 = vld [vmem:[#allocation12 + $0x120] sm:$0xff] }
 0x1dc   : > { %1453 = vmatmul.mubr.msk.f32.vlgmr.msra.gmra.mrb[2].mxu0 %vm456_vm2, %v434_v24  ;;  %1454 = vmatmul.mubr.msk.f32.vlgmr.msra.gmra.mrb[2].mxu1 %vm456_vm2, %v434_v24  ;;  %v853_v24 = vld [vmem:[#allocation10 + $0x178] sm:$0xff]  ;;  %v1585_v38 = vpack.c.bf16 %v852_v32, %v848_v31  ;;  %v1111_v31 = vld [vmem:[#allocation12 + $0xb0] sm:$0xff] }
 0x1dd   : > { %1534 = vmatpush1.bf16.msra.mxu0 %v1533_v41  ;;  %1566 = vmatpush1.bf16.msra.mxu1 %v1565_v42  ;;  %v1583_v30 = vpack.c.bf16 %v853_v24, %v849_v23  ;;  %v1555_v41 = vpack.c.bf16 %v859_v34, %v855_v33  ;;  %v1587_v42 = vpack.c.bf16 %v861_v36, %v857_v35  ;;  %v1141_v23 = vld [vmem:[#allocation12 + $0x1a0] sm:$0xff]  ;;  %v1142_v24 = vld [vmem:[#allocation12 + $0x1a8] sm:$0xff]  ;;  %v1112_v32 = vld [vmem:[#allocation12 + $0xb8] sm:$0xff] }
 0x1de   : > { %1536 = vmatprep.subr.bf16.mxu0 %v1535_v45  ;;  %1568 = vmatprep.subr.bf16.mxu1 %v1567_v46  ;;  %v863_v45 = vld [vmem:[#allocation10 + $0x1c8] sm:$0xff]  ;;  %v1143_v33 = vld [vmem:[#allocation12 + $0x1b0] sm:$0xff]  ;;  %v1607_v35 = vpack.c.bf16 %v1112_v32, %v1111_v31  ;;  %v1144_v36 = vld [vmem:[#allocation12 + $0x1b8] sm:$0xff] }
 0x1df   : > { %957 = vmatprep.mubr.f32.mxu0 %v2045_v8  ;;  %1028 = vmatprep.mubr.f32.mxu1 %v2045_v8  ;;  %v1577_v8 = vpack.c.bf16 %v836_v9, %v832_v7  ;;  %v867_v46 = vld [vmem:[#allocation10 + $0x1e8] sm:$0xff]  ;;  %v1107_v7 = vld [vmem:[#allocation12 + $0x90] sm:$0xff]  ;;  %v1639_v39 = vpack.c.bf16 %v1144_v36, %v1143_v33 }
 0x1e0   : > { %v1559_v52 = vpack.c.bf16 %v867_v46, %v863_v45  ;;  %v1599_v13 = vpack.c.bf16 %v1108_v10, %v1107_v7  ;;  %v747_v45 = vshrl.u32 %v746_v44, 7 }
 0x1e1   : > { %1538 = vmatpush1.bf16.msra.mxu0 %v1537_v53  ;;  %1570 = vmatpush1.bf16.msra.mxu1 %v1569_v54  ;;  %v1591_v53 = vpack.c.bf16 %v869_v48, %v865_v47  ;;  %v866_v54 = vld [vmem:[#allocation10 + $0x1e0] sm:$0xff]  ;;  %v744_v48 = vld [vmem:[#allocation9] ss:$4 sm:$0xf] }
 0x1e2   : > { %1540 = vmatprep.subr.bf16.mxu0 %v1539_v57  ;;  %1572 = vmatprep.subr.bf16.mxu1 %v1571_v58  ;;  %v1561_v57 = vpack.c.bf16 %v866_v54, %v862_v51  ;;  %v1593_v58 = vpack.c.bf16 %v868_v56, %v864_v55  ;;  %v2340_v46 = vsub.s32 2, %v747_v45  ;;  %v748_v47 = vsub.s32 0, %v747_v45  ;;  %v775_v55 = vld [vmem:[#allocation9 + $0x1] ss:$4 sm:$0xf] }
 0x1e4   : > { %v757_v51 = vrot.slane %v744_v48, %v2340_v46  ;;  %v780_v62 = vrot.slane %v775_v55, %v748_v47 }
 0x1e5   : > { %1542 = vmatpush1.bf16.msra.mxu0 %v1541_v1  ;;  %1574 = vmatpush1.bf16.msra.mxu1 %v1573_v2  ;;  %v1089_v1 = vld [vmem:[#allocation12] sm:$0xff]  ;;  %v1090_v2 = vld [vmem:[#allocation12 + $0x8] sm:$0xff] }
 0x1e6   : > { %1544 = vmatprep.subr.bf16.mxu0 %v1543_v5  ;;  %1576 = vmatprep.subr.bf16.mxu1 %v1575_v6  ;;  %v1597_v4 = vpack.c.bf16 %v1090_v2, %v1089_v1  ;;  %v1121_v5 = vld [vmem:[#allocation12 + $0x100] sm:$0xff]  ;;  %v1122_v6 = vld [vmem:[#allocation12 + $0x108] sm:$0xff] }
 0x1e7   : > { %v1629_v9 = vpack.c.bf16 %v1122_v6, %v1121_v5  ;;  %v1042_v5 = vstv %s1039_s24 }
 0x1e9   : > { %1546 = vmatpush1.bf16.msra.mxu0 %v1545_v14  ;;  %1578 = vmatpush1.bf16.msra.mxu1 %v1577_v8  ;;  %v1631_v14 = vpack.c.bf16 %v1140_v12, %v1139_v11  ;;  %v1091_v8 = vld [vmem:[#allocation12 + $0x10] sm:$0xff]  ;;  %v1047_v11 = vstv %s1455_s25 }
 0x1ea   : > { %1548 = vmatprep.subr.bf16.mxu0 %v1547_v17  ;;  %1580 = vmatprep.subr.bf16.mxu1 %v1579_v18  ;;  %v1601_v17 = vpack.c.bf16 %v1092_v15, %v1091_v8  ;;  %v1124_v18 = vld [vmem:[#allocation12 + $0x118] sm:$0xff] }
 0x1eb   : > { %v1633_v21 = vpack.c.bf16 %v1124_v18, %v1123_v16 }
 0x1ed   : > { %1550 = vmatpush1.bf16.msra.mxu0 %v1549_v25  ;;  %1582 = vmatpush1.bf16.msra.mxu1 %v1581_v26  ;;  %v1093_v25 = vld [vmem:[#allocation12 + $0x20] sm:$0xff]  ;;  %v1635_v26 = vpack.c.bf16 %v1142_v24, %v1141_v23 }
 0x1ee   : > { %1552 = vmatprep.subr.bf16.mxu0 %v1551_v29  ;;  %1584 = vmatprep.subr.bf16.mxu1 %v1583_v30  ;;  %v1126_v29 = vld [vmem:[#allocation12 + $0x128] sm:$0xff]  ;;  %v1605_v30 = vpack.c.bf16 %v1094_v27, %v1093_v25 }
 0x1ef   : > { %v1637_v34 = vpack.c.bf16 %v1126_v29, %v1125_v28 }
 0x1f1   : > { %1554 = vmatpush1.bf16.msra.mxu0 %v1553_v37  ;;  %1586 = vmatpush1.bf16.msra.mxu1 %v1585_v38  ;;  %v1095_v37 = vld [vmem:[#allocation12 + $0x30] sm:$0xff]  ;;  %v1096_v38 = vld [vmem:[#allocation12 + $0x38] sm:$0xff] }
 0x1f2   : > { %1556 = vmatprep.subr.bf16.mxu0 %v1555_v41  ;;  %1588 = vmatprep.subr.bf16.mxu1 %v1587_v42  ;;  %v1128_v41 = vld [vmem:[#allocation12 + $0x138] sm:$0xff]  ;;  %v1609_v42 = vpack.c.bf16 %v1096_v38, %v1095_v37 }
 0x1f3   : > { %v1641_v43 = vpack.c.bf16 %v1128_v41, %v1127_v40 }
 0x1f5   : > { %1558 = vmatpush1.bf16.msra.mxu0 %v1557_v49  ;;  %1590 = vmatpush1.bf16.msra.mxu1 %v1589_v50  ;;  %v2342_v49 = vsub.s32 1, %v747_v45  ;;  %v2344_v50 = vsub.s32 3, %v747_v45  ;;  %v1056_v45 = vstv %s1456_s14 }
 0x1f6   : > { %1560 = vmatprep.subr.bf16.mxu0 %v1559_v52  ;;  %1592 = vmatprep.subr.bf16.mxu1 %v1591_v53  ;;  %v749_v52 = vrot.slane %v744_v48, %v748_v47 }
 0x1f7   : > { %v753_v53 = vrot.slane %v744_v48, %v2342_v49  ;;  %v761_v54 = vrot.slane %v744_v48, %v2344_v50  ;;  %v784_v2 = vrot.slane %v775_v55, %v2342_v49 }
 0x1f9   : > { %1562 = vmatpush1.bf16.msra.mxu0 %v1561_v57  ;;  %1594 = vmatpush1.bf16.msra.mxu1 %v1593_v58 }
 0x1fa   : > { %1596 = vmatprep.subr.bf16.mxu0 %v1595_v63  ;;  %1628 = vmatprep.subr.bf16.mxu1 %v1627_v3  ;;  %v788_v63 = vrot.slane %v775_v55, %v2340_v46  ;;  %v792_v3 = vrot.slane %v775_v55, %v2344_v50 }
 0x1fc   : > { %958 = vmatmul.mubr.f32.vlgmr.msra.gmra.mrb[4].mxu0 %v805_v59  ;;  %1029 = vmatmul.mubr.f32.vlgmr.msra.gmra.mrb[4].mxu1 %v805_v59 }
 0x1fd   : > { %1598 = vmatpush3.bf16.msra.mxu0 %v1597_v4  ;;  %1630 = vmatpush3.bf16.msra.mxu1 %v1629_v9 }
 0x1fe   : > { %1600 = vmatprep.subr.bf16.mxu0 %v1599_v13  ;;  %1632 = vmatprep.subr.bf16.mxu1 %v1631_v14 }
 0x201   : > { %1602 = vmatpush3.bf16.msra.mxu0 %v1601_v17  ;;  %1634 = vmatpush3.bf16.msra.mxu1 %v1633_v21 }
 0x202   : > { %1604 = vmatprep.subr.bf16.mxu0 %v1603_v22  ;;  %1636 = vmatprep.subr.bf16.mxu1 %v1635_v26 }
 0x205   : > { %1606 = vmatpush3.bf16.msra.mxu0 %v1605_v30  ;;  %1638 = vmatpush3.bf16.msra.mxu1 %v1637_v34  ;;  %v871_v34 = vld [vmem:[#allocation9 + $0x2] ss:$4 sm:$0xf] }
 0x206   : > { %1608 = vmatprep.subr.bf16.mxu0 %v1607_v35  ;;  %1640 = vmatprep.subr.bf16.mxu1 %v1639_v39  ;;  %v876_v35 = vrot.slane %v871_v34, %v748_v47  ;;  %v884_v36 = vrot.slane %v871_v34, %v2340_v46  ;;  %v880_v37 = vrot.slane %v871_v34, %v2342_v49 }
 0x207   : > { %v888_v38 = vrot.slane %v871_v34, %v2344_v50  ;;  %v1117_v34 = vld [vmem:[#allocation12 + $0xe0] sm:$0xff] }
 0x209   : > { %1610 = vmatpush3.bf16.msra.mxu0 %v1609_v42  ;;  %1642 = vmatpush3.bf16.msra.mxu1 %v1641_v43 }
 0x2aa   : > { %v526_v56 = vpop.f32.mrb[0].mxu0  ;;  %v597_v57 = vpop.f32.mrb[0].mxu1 }
 0x2ab   : > { %v528_v58 = vpop.f32.mrb[1].mxu0  ;;  %v768_v59 = vadd.f32 %v757_v51, %v597_v57  ;;  %v599_v60 = vpop.f32.mrb[1].mxu1  ;;  %v766_v61 = vadd.f32 %v749_v52, %v526_v56 }
 0x2ac   : > { %v767_v0 = vadd.f32 %v753_v53, %v528_v58  ;;  %v769_v1 = vadd.f32 %v761_v54, %v599_v60 }
 0x2ad   : > { %v772_v4 = vmax.f32 %v768_v59, 0.0  ;;  %v770_v9 = vmax.f32 %v766_v61, 0.0 }
 0x2ae   : > { %v771_v8 = vmax.f32 %v767_v0, 0.0  ;;  %v773_v15 = vmax.f32 %v769_v1, 0.0 }
 0x2af   : > { %v668_v6 = vpop.f32.mrb[2].mxu0  ;;  %v739_v7 = vpop.f32.mrb[2].mxu1  ;;  %v1045_v18 = vmul.f32 %v1042_v5, %v772_v4  ;;  %v1043_v23 = vmul.f32 %v1042_v5, %v770_v9 }
 0x2b0   : > { %v797_v10 = vadd.f32 %v780_v62, %v668_v6  ;;  %v799_v12 = vadd.f32 %v788_v63, %v739_v7  ;;  %v670_v13 = vpop.f32.mrb[3].mxu0  ;;  %v741_v14 = vpop.f32.mrb[3].mxu1  ;;  %v1044_v26 = vmul.f32 %v1042_v5, %v771_v8  ;;  %v1046_v27 = vmul.f32 %v1042_v5, %v773_v15  ;;  %v1146_v15 = vld [vmem:[#allocation12 + $0x1c8] sm:$0xff] }
 0x2b1   : > { %v798_v16 = vadd.f32 %v784_v2, %v670_v13  ;;  %v800_v17 = vadd.f32 %v792_v3, %v741_v14  ;;  %v1114_v13 = vld [vmem:[#allocation12 + $0xc8] sm:$0xff]  ;;  %v1145_v14 = vld [vmem:[#allocation12 + $0x1c0] sm:$0xff] }
 0x2b2   : > { %v801_v19 = vmax.f32 %v797_v10, 0.0  ;;  %v803_v20 = vmax.f32 %v799_v12, 0.0  ;;  %v1113_v12 = vld [vmem:[#allocation12 + $0xc0] sm:$0xff] }
 0x2b3   : > { %v802_v21 = vmax.f32 %v798_v16, 0.0  ;;  %v804_v22 = vmax.f32 %v800_v17, 0.0  ;;  %v1611_v8 = vpack.c.bf16 %v1114_v13, %v1113_v12  ;;  %v1097_v16 = vld [vmem:[#allocation12 + $0x40] sm:$0xff]  ;;  %v1098_v17 = vld [vmem:[#allocation12 + $0x48] sm:$0xff] }
 0x2b4   : > { %v1048_v24 = vmul.f32 %v1047_v11, %v801_v19  ;;  %v1050_v25 = vmul.f32 %v1047_v11, %v803_v20  ;;  %v1613_v19 = vpack.c.bf16 %v1098_v17, %v1097_v16  ;;  %v1129_v20 = vld [vmem:[#allocation12 + $0x140] sm:$0xff] }
 0x2b5   : > { %v1049_v28 = vmul.f32 %v1047_v11, %v802_v21  ;;  %v1051_v29 = vmul.f32 %v1047_v11, %v804_v22  ;;  %v1130_v21 = vld [vmem:[#allocation12 + $0x148] sm:$0xff]  ;;  %1612 = vmatprep.subr.bf16.mxu0 %v1611_v8 }
 0x2b6   : > { %v1052_v30 = vadd.f32 %v1048_v24, %v1043_v23  ;;  %v1054_v31 = vadd.f32 %v1050_v25, %v1045_v18  ;;  %v1643_v18 = vpack.c.bf16 %v1146_v15, %v1145_v14  ;;  %v1645_v22 = vpack.c.bf16 %v1130_v21, %v1129_v20  ;;  %1614 = vmatpush3.bf16.msra.mxu0 %v1613_v19  ;;  %v1115_v23 = vld [vmem:[#allocation12 + $0xd0] sm:$0xff]  ;;  %v1116_v24 = vld [vmem:[#allocation12 + $0xd8] sm:$0xff] }
 0x2b7   : > { %v1053_v32 = vadd.f32 %v1049_v28, %v1044_v26  ;;  %v1055_v33 = vadd.f32 %v1051_v29, %v1046_v27  ;;  %v1147_v25 = vld [vmem:[#allocation12 + $0x1d0] sm:$0xff]  ;;  %v1615_v26 = vpack.c.bf16 %v1116_v24, %v1115_v23  ;;  %v1148_v27 = vld [vmem:[#allocation12 + $0x1d8] sm:$0xff] }
 0x2b8   : > { %1644 = vmatprep.subr.bf16.mxu1 %v1643_v18  ;;  %v1099_v28 = vld [vmem:[#allocation12 + $0x50] sm:$0xff]  ;;  %v1100_v29 = vld [vmem:[#allocation12 + $0x58] sm:$0xff] }
 0x2b9   : > { %1646 = vmatpush3.bf16.msra.mxu1 %v1645_v22  ;;  %1616 = vmatprep.subr.bf16.mxu0 %v1615_v26 }
 0x2cf   : > { %v959_v39 = vpop.f32.mrb[4].mxu0  ;;  %v1030_v40 = vpop.f32.mrb[4].mxu1 }
 0x2d0   : > { %v960_v41 = vadd.f32 %v959_v39, %v876_v35  ;;  %v1031_v42 = vadd.f32 %v1030_v40, %v884_v36  ;;  %v961_v43 = vpop.f32.mrb[5].mxu0  ;;  %v1032_v44 = vpop.f32.mrb[5].mxu1  ;;  %v1118_v36 = vld [vmem:[#allocation12 + $0xe8] sm:$0xff] }
 0x2d1   : > { %v962_v48 = vadd.f32 %v961_v43, %v880_v37  ;;  %v1033_v51 = vadd.f32 %v1032_v44, %v888_v38  ;;  %v1149_v37 = vld [vmem:[#allocation12 + $0x1e0] sm:$0xff]  ;;  %v1150_v38 = vld [vmem:[#allocation12 + $0x1e8] sm:$0xff]  ;;  %v1619_v39 = vpack.c.bf16 %v1118_v36, %v1117_v34 }
 0x2d2   : > { %v1035_v52 = vmax.f32 %v960_v41, 0.0  ;;  %v1037_v53 = vmax.f32 %v1031_v42, 0.0  ;;  %v1651_v40 = vpack.c.bf16 %v1150_v38, %v1149_v37  ;;  %v1101_v41 = vld [vmem:[#allocation12 + $0x60] sm:$0xff]  ;;  %v1102_v42 = vld [vmem:[#allocation12 + $0x68] sm:$0xff] }
 0x2d3   : > { %v1036_v54 = vmax.f32 %v962_v48, 0.0  ;;  %v1038_v55 = vmax.f32 %v1033_v51, 0.0  ;;  %v1133_v43 = vld [vmem:[#allocation12 + $0x160] sm:$0xff]  ;;  %v1621_v44 = vpack.c.bf16 %v1102_v42, %v1101_v41  ;;  %v1119_v48 = vld [vmem:[#allocation12 + $0xf0] sm:$0xff]  ;;  %v1120_v51 = vld [vmem:[#allocation12 + $0xf8] sm:$0xff] }
 0x2d4   : > { %v1057_v47 = vmul.f32 %v1056_v45, %v1035_v52  ;;  %v1059_v56 = vmul.f32 %v1056_v45, %v1037_v53  ;;  %v1623_v53 = vpack.c.bf16 %v1120_v51, %v1119_v48 }
 0x2d5   : > { %v1058_v46 = vmul.f32 %v1056_v45, %v1036_v54  ;;  %v1060_v57 = vmul.f32 %v1056_v45, %v1038_v55  ;;  %v1134_v45 = vld [vmem:[#allocation12 + $0x168] sm:$0xff]  ;;  %v1151_v54 = vld [vmem:[#allocation12 + $0x1f0] sm:$0xff]  ;;  %v1152_v55 = vld [vmem:[#allocation12 + $0x1f8] sm:$0xff] }
 0x2d6   : > { %v1061_v49 = vadd.f32 %v1057_v47, %v1052_v30  ;;  %v1063_v58 = vadd.f32 %v1059_v56, %v1054_v31  ;;  %v1647_v30 = vpack.c.bf16 %v1148_v27, %v1147_v25  ;;  %v1617_v31 = vpack.c.bf16 %v1100_v29, %v1099_v28  ;;  %v1103_v47 = vld [vmem:[#allocation12 + $0x70] sm:$0xff] }
 0x2d7   : > { %v1062_v50 = vadd.f32 %v1058_v46, %v1053_v32  ;;  %v1064_v59 = vadd.f32 %v1060_v57, %v1055_v33  ;;  %v1131_v32 = vld [vmem:[#allocation12 + $0x150] sm:$0xff]  ;;  %v1132_v33 = vld [vmem:[#allocation12 + $0x158] sm:$0xff]  ;;  %v1653_v52 = vpack.c.bf16 %v1134_v45, %v1133_v43  ;;  %v1655_v56 = vpack.c.bf16 %v1152_v55, %v1151_v54 }
 0x2d8   : > { %v2355_v60 = vmax.f32 %v1061_v49, 0.0  ;;  %v2357_v61 = vmax.f32 %v1063_v58, 0.0  ;;  %v1649_v35 = vpack.c.bf16 %v1132_v33, %v1131_v32  ;;  %1648 = vmatprep.subr.bf16.mxu1 %v1647_v30  ;;  %1618 = vmatpush3.bf16.msra.mxu0 %v1617_v31  ;;  %v1104_v46 = vld [vmem:[#allocation12 + $0x78] sm:$0xff]  ;;  %v1135_v57 = vld [vmem:[#allocation12 + $0x170] sm:$0xff] }
 0x2d9   : > { %v2359_v62 = vmax.f32 %v1062_v50, 0.0  ;;  %v2361_v63 = vmax.f32 %v1064_v59, 0.0  ;;  %1620 = vmatprep.subr.bf16.mxu0 %v1619_v39  ;;  %v1136_v49 = vld [vmem:[#allocation12 + $0x178] sm:$0xff]  ;;  %v1625_v58 = vpack.c.bf16 %v1104_v46, %v1103_v47 }
 0x2da   : > { %v1069_v0 = vmul.f32 %v2355_v60, %v2355_v60  ;;  %v1071_v2 = vmul.f32 %v2357_v61, %v2357_v61  ;;  %1650 = vmatpush3.bf16.msra.mxu1 %v1649_v35  ;;  %v1657_v50 = vpack.c.bf16 %v1136_v49, %v1135_v57 }
 0x2db   : > { %v1070_v1 = vmul.f32 %v2359_v62, %v2359_v62  ;;  %v1072_v4 = vmul.f32 %v2361_v63, %v2361_v63  ;;  %1652 = vmatprep.subr.bf16.mxu1 %v1651_v40 }
 0x2dc   : > { %v1074_v3 = vsel %vm1073_vm3, %v1069_v0, 0.0  ;;  %v1077_v7 = vsel %vm1073_vm3, %v1071_v2, 0.0  ;;  %1622 = vmatpush3.bf16.msra.mxu0 %v1621_v44 }
 0x2dd   : > { %v1075_v5 = vsel %vm1073_vm3, %v1070_v1, 0.0  ;;  %v1079_v10 = vsel %vm1073_vm3, %v1072_v4, 0.0  ;;  %1624 = vmatprep.subr.bf16.mxu0 %v1623_v53 }
 0x2de   : > { %v1076_v6 = vadd.f32 %v1075_v5, %v1074_v3  ;;  %1654 = vmatpush3.bf16.msra.mxu1 %v1653_v52 }
 0x2df   : > { %1656 = vmatprep.subr.bf16.mxu1 %v1655_v56 }
 0x2e0   : > { %v1078_v9 = vadd.f32 %v1077_v7, %v1076_v6  ;;  %1626 = vmatpush3.bf16.msra.mxu0 %v1625_v58 }
 0x2e2   : > { %v1080_v11 = vadd.f32 %v1079_v10, %v1078_v9  ;;  %1658 = vmatpush3.bf16.msra.mxu1 %v1657_v50 }
 0x2e4   : > { %1081 = vadd.xlane.f32.xlu0 %v1080_v11 }
 0x371   : > { %v1082_v59 = vpop.xlane.xlu0 %1081 }
 0x372   : > { %v1083_v0 = vmax.f32 %v1082_v59, 1e-24 }
 0x374   : > { %1780 = vrsqrt.f32 %v1083_v0 }
 0x37e   : > { %v1781_v1 = vpop.eup %1780 }
 0x37f   : > { %v1086_v2 = vmul.f32 %v1781_v1, %v2359_v62  ;;  %v1088_v3 = vmul.f32 %v1781_v1, %v2361_v63  ;;  %v1085_v4 = vmul.f32 %v1781_v1, %v2355_v60  ;;  %v1087_v5 = vmul.f32 %v1781_v1, %v2357_v61 }
 0x381   : > { %1217 = vmatprep.mubr.f32.mxu0 %v1086_v2  ;;  %1287 = vmatprep.mubr.f32.mxu1 %v1088_v3 }
 0x382   : > { %1218 = vmatmul.mubr.f32.vlgmr.msra.gmra.mrb[6].mxu0 %v1085_v4  ;;  %1288 = vmatmul.mubr.f32.vlgmr.msra.gmra.mrb[6].mxu1 %v1087_v5 }
 0x455   : > { %v1493_v6 = vpop.f32.mrb[6].mxu0  ;;  %v1528_v7 = vpop.f32.mrb[6].mxu1 }
 0x456   : > { %v1494_v9 = vpop.f32.mrb[7].mxu0  ;;  %v1529_v10 = vpop.f32.mrb[7].mxu1 }
 0x457   : > { %v1495_v11 = vadd.f32 %v1494_v9, %v1493_v6  ;;  %v1530_v12 = vadd.f32 %v1529_v10, %v1528_v7 }
 0x459   : > { %v1290_v13 = vadd.f32 %v1530_v12, %v1495_v11 }
 0x45b   : > { %1293 = vst [vmem:[#allocation14] sm:$0x3] %v1290_v13 }
 0x45c PF: > { %s2446_s16 = sadd.s32 4294967295, %s2031_s10   ;;  %s2046_s20 = smov [#allocation14]  }
 0x45d   : > { %p2377_p0 = scmp.eq.s32.totalorder %s2446_s16, 1  ;;  %s1303_s23 = sshll.u32 %s2046_s20, 4  ;;  %s1304_s23 = int_to_ptr.vmem [resolvable:$true] %s1303_s23 }
 0x45e   : > { %s1939_s27 = scalar_lea.vmem %s1304_s23, 32  ;;  %p1946_p8 = scmp.lt.s32.totalorder %s1304_s23, %s1304_s23 }
 0x45f   : > { %p1940_p2 = scmp.ne.s32.totalorder %s1304_s23, %s1939_s27  ;;  %p1947_p1 = scmp.lt.s32.totalorder %s1939_s27, %s1939_s27 }
 0x461   : > { %p1941_p4 = pnand %p1940_p2, %p2377_p0  ;;  %p1948_p10 = por %p1947_p1, %p1946_p8 }
 0x463   : > { %p1942_p6 = pneg %p1941_p4 }
 0x465   : > { %p1949_p7 = pnand %p1948_p10, %p1942_p6 }
 0x467   : > { %1952 = shalt.err (!%p1949_p7)
}
 0x468   : > { %s1953_s22 = scalar_lea.hbm %s2429_s8, 32 }
 0x469   : > { %p1954_p12 = scmp.ne.s32.totalorder %s2429_s8, %s1953_s22  ;;  %p1959_p3 = scmp.lt.u32.totalorder %s1953_s22, %s2429_s8 }
 0x46b   : > { %p1955_p13 = pnand %p1954_p12, %p2377_p0 }
 0x46d   : > { %p1956_p11 = pneg %p1955_p13 }
 0x46f   : > { %p1961_p9 = pnand %p1959_p3, %p1956_p11 }
 0x471   : > { %1964 = shalt.err (!%p1961_p9)
}
 0x472   : > { %1682 = dma.vmem_to_hbm [thread:$0]  (%p2377_p0), %s1304_s23, 32, %s2429_s8, [#allocation5]  }
 0x473   : > { %2006 = dma.done.wait (%p2377_p0), [#allocation5], 32  }
 0x474   : > { %2008 = vsyncadd (%p2377_p0), [#allocation5], 4294967264 }
 0x475 PF: > { %s25_s10 = sadd.s32 1, %s2031_s10   ;;  %s2448_s27 = smov %s2015_s28 }
 0x476   : > { %p22_p5 = scmp.ge.s32.totalorder %s25_s10, 4   ;;  %s2449_s28 = smov %s2019_s29 }
 0x477   : > { %s2450_s29 = smov %s2263_s17  ;;  %s2451_s30 = smov %s2027_s9 }
 0x478   : > { %s2452_s9 = smov %s2454_s26  ;;  %24 = sbr.rel (!%p22_p5) target bundleno = 10 (0xa), region = 124 }
 0x47f   :  { %1316 = vsyncpa [#allocation4], 1 }
 0x480   :  { %1318 = vsyncpa [#allocation4 + $0x1], 1 }
 0x481   :  { %1319 = vsyncpa [#allocation8], 1 }
 0x482   :  { %1320 = vsyncpa [#allocation11], 1 }
 0x483   :  { %1321 = vsyncpa [#allocation5], 1 }
 0x484   :  { %1323 = vsyncpa [#allocation5 + $0x1], 1 }
 0x485   :  { %1324 = vsyncpa [#allocation6], 1 }
 0x486   :  { %1326 = vsyncpa [#allocation6 + $0x1], 1 }

</bundles_post_ra>
